<compile_context>
chip_gen: v5e
topology: v5e:2x2
jax: 0.10.0
libtpu: 0.0.40
codegen_flags: <defaults>
</compile_context>

<pallas_src>
import functools

import jax
import jax.numpy as jnp
from jax import lax
from jax.experimental import pallas as pl
from jax.experimental.pallas import tpu as pltpu

EPS = 1e-5

_VMEM_TILE_BUDGET = 16 * 1024 * 1024   # bytes for the 6 pipelined tile buffers
_MAX_BLOCK_ROWS = 4096                 # 2 MiB / stream / block at W=128
_VMEM_LIMIT = 32 * 1024 * 1024         # safe on v5e/v6e/v7x


def _cdiv(a, b):
    return -(-a // b)


def _round_up(a, b):
    return _cdiv(a, b) * b


def _addnorm_folded_kernel(x_ref, y_ref, g_ref, b_ref, m_ref, o_ref, *, inv_h):
    """Lane-dense path: each physical 128-lane row holds F logical rows of width H.

    m_ref is a (W, W) block-diagonal ones matrix (bf16, exact); z @ M replicates
    each H-segment's sum across that segment's lanes (segmented keepdims-reduce
    on the otherwise-idle MXU, no cross-lane XLU shuffles, unmasked full-width
    loads/stores).
    """
    # TODO(synk): training-mode dropout (stochastic mask) omitted; identity (eval mode).
    z = x_ref[...].astype(jnp.float32) + y_ref[...].astype(jnp.float32)
    gamma = g_ref[...]                     # hoisted (1, W) loads
    beta = b_ref[...]
    seg = m_ref[...]                       # (W, W) block-diag ones, bf16

    def seg_sum(a):
        # 2-term bf16 split of the LHS -> two single-pass MXU matmuls with f32
        # accumulation.  RHS (0/1) is exact in bf16, so accuracy ~1e-6 relative
        # at a third of the MXU cost of precision=HIGHEST.
        a_hi = a.astype(jnp.bfloat16)
        a_lo = (a - a_hi.astype(jnp.float32)).astype(jnp.bfloat16)
        return (jnp.dot(a_hi, seg, preferred_element_type=jnp.float32)
                + jnp.dot(a_lo, seg, preferred_element_type=jnp.float32))

    mean = seg_sum(z) * inv_h
    centered = z - mean
    var = seg_sum(centered * centered) * inv_h
    inv = lax.rsqrt(var + EPS)
    o_ref[...] = (centered * inv * gamma + beta).astype(o_ref.dtype)


def _addnorm_plain_kernel(x_ref, y_ref, g_ref, b_ref, o_ref):
    """Fallback path (H >= 128, or rare lane-sparse shapes): reduce over lanes."""
    z = x_ref[...].astype(jnp.float32) + y_ref[...].astype(jnp.float32)
    gamma = g_ref[...]
    beta = b_ref[...]
    mean = jnp.mean(z, axis=-1, keepdims=True)
    centered = z - mean
    var = jnp.mean(centered * centered, axis=-1, keepdims=True)
    inv = lax.rsqrt(var + EPS)
    o_ref[...] = (centered * inv * gamma + beta).astype(o_ref.dtype)


def _choose_block_rows(rows, width):
    """Byte-budget-based row tile: 3 streams x 2 buffers x width x 4 B per row."""
    bytes_per_row = 3 * 2 * width * 4
    br = max(8, (_VMEM_TILE_BUDGET // bytes_per_row) // 8 * 8)
    br = min(br, _MAX_BLOCK_ROWS)
    # Keep at least 2 grid steps when there is meaningful work so the parallel
    # row axis can shard across v7x's two TensorCores.
    if rows >= 16:
        br = min(br, _round_up(_cdiv(rows, 2), 8))
    if br >= rows:
        br = rows          # single block spanning the full (short) row dim
    return br


def add_norm(x, y, gamma, beta):
    """x, y: (B, S, H); gamma, beta: (H,).  Returns LayerNorm(y + x) over H."""
    B, S, H = x.shape
    R = B * S
    gamma = gamma.astype(jnp.float32)
    beta = beta.astype(jnp.float32)

    # Lane-dense fold: pack F = 128 // H logical rows into one 128-lane physical
    # row (pure metadata reshape, only when it divides evenly — no copies).
    if H < 128 and 128 % H == 0 and R % (128 // H) == 0:
        F = 128 // H
    else:
        # TODO(synk): lane-sparse shapes (H < 128 with 128 % H != 0, or ragged
        # row counts) take the plain path with masked stores; rare in practice.
        F = 1
    W = F * H
    Rf = R // F

    xf = x.reshape(Rf, W)
    yf = y.reshape(Rf, W)

    block_rows = _choose_block_rows(Rf, W)
    grid = (_cdiv(Rf, block_rows),)        # ragged last block: OOB rows dropped

    row_spec = pl.BlockSpec((block_rows, W), lambda i: (i, 0))
    vec_spec = pl.BlockSpec((1, W), lambda i: (0, 0))

    if F > 1:
        gW = jnp.tile(gamma, F).reshape(1, W)
        bW = jnp.tile(beta, F).reshape(1, W)
        seg_id = jnp.arange(W) // H
        seg = (seg_id[:, None] == seg_id[None, :]).astype(jnp.bfloat16)  # (W, W)
        kernel = functools.partial(_addnorm_folded_kernel, inv_h=1.0 / H)
        in_specs = [row_spec, row_spec, vec_spec, vec_spec,
                    pl.BlockSpec((W, W), lambda i: (0, 0))]
        args = (xf, yf, gW, bW, seg)
    else:
        gW = gamma.reshape(1, W)
        bW = beta.reshape(1, W)
        kernel = _addnorm_plain_kernel
        in_specs = [row_spec, row_spec, vec_spec, vec_spec]
        args = (xf, yf, gW, bW)

    out = pl.pallas_call(
        kernel,
        out_shape=jax.ShapeDtypeStruct((Rf, W), x.dtype),
        grid_spec=pltpu.PrefetchScalarGridSpec(
            num_scalar_prefetch=0,
            grid=grid,
            in_specs=in_specs,
            out_specs=row_spec,
        ),
        compiler_params=pltpu.CompilerParams(
            dimension_semantics=("parallel",),   # row grid shards across TCs on v7x
            vmem_limit_bytes=_VMEM_LIMIT,
        ),
    )(*args)

    # Pure metadata reshape back to (B, S, H) — no slicing, no extra HBM traffic.
    return out.reshape(B, S, H)


if __name__ == "__main__":
    # Small shapes consistent with the module: normalized_shape = hidden = 32.
    B, S, H = 2, 8, 32

    key = jax.random.PRNGKey(0)
    kx, ky = jax.random.split(key)
    X = jax.random.normal(kx, (B, S, H), dtype=jnp.float32)
    Y = jax.random.normal(ky, (B, S, H), dtype=jnp.float32)

    # Deterministic parameter init (matches PyTorch LayerNorm defaults).
    gamma = jnp.ones((H,), dtype=jnp.float32)
    beta = jnp.zeros((H,), dtype=jnp.float32)

    out = add_norm(X, Y, gamma, beta)
    out = jax.block_until_ready(out)

    # Reference check (pure JAX) — same math as nn.LayerNorm(dropout(Y)+X) in eval mode.
    z = X + Y
    mean = jnp.mean(z, axis=-1, keepdims=True)
    var = jnp.mean((z - mean) ** 2, axis=-1, keepdims=True)
    ref = (z - mean) * lax.rsqrt(var + EPS) * gamma + beta
    assert jnp.allclose(out, ref, atol=1e-5, rtol=1e-5), "mismatch vs reference"

    print("KERNEL_OK")
</pallas_src>

<mosaic_0001>
module attributes {stable_mosaic.version = 11 : i64} {
  func.func @_addnorm_folded_kernel(%arg0: i32, %arg1: memref<4x128xf32, #tpu.memory_space<vmem>>, %arg2: memref<4x128xf32, #tpu.memory_space<vmem>>, %arg3: memref<1x128xf32, #tpu.memory_space<vmem>>, %arg4: memref<1x128xf32, #tpu.memory_space<vmem>>, %arg5: memref<128x128xbf16, #tpu.memory_space<vmem>>, %arg6: memref<4x128xf32, #tpu.memory_space<vmem>>) attributes {dimension_semantics = [#tpu.dimension_semantics<parallel>], iteration_bounds = array<i64: 1>, scalar_prefetch = 0 : i64, scratch_operands = 0 : i64, tpu.core_type = #tpu.core_type<tc>, window_params = [{transform_indices = @transform_0, window_bounds = array<i64: 4, 128>}, {transform_indices = @transform_1, window_bounds = array<i64: 4, 128>}, {pipeline_mode = #tpu.pipeline_mode<synchronous>, transform_indices = @transform_2, window_bounds = array<i64: 1, 128>}, {pipeline_mode = #tpu.pipeline_mode<synchronous>, transform_indices = @transform_3, window_bounds = array<i64: 1, 128>}, {pipeline_mode = #tpu.pipeline_mode<synchronous>, transform_indices = @transform_4, window_bounds = array<i64: 128, 128>}, {transform_indices = @transform_5, window_bounds = array<i64: 4, 128>}]} {
    %c0 = arith.constant 0 : index
    %c0_0 = arith.constant 0 : index
    %0 = vector.load %arg1[%c0, %c0_0] : memref<4x128xf32, #tpu.memory_space<vmem>>, vector<4x128xf32>
    %c0_1 = arith.constant 0 : index
    %c0_2 = arith.constant 0 : index
    %1 = vector.load %arg2[%c0_1, %c0_2] : memref<4x128xf32, #tpu.memory_space<vmem>>, vector<4x128xf32>
    %2 = arith.addf %0, %1 : vector<4x128xf32>
    %c0_3 = arith.constant 0 : index
    %c0_4 = arith.constant 0 : index
    %3 = vector.load %arg3[%c0_3, %c0_4] : memref<1x128xf32, #tpu.memory_space<vmem>>, vector<1x128xf32>
    %c0_5 = arith.constant 0 : index
    %c0_6 = arith.constant 0 : index
    %4 = vector.load %arg4[%c0_5, %c0_6] : memref<1x128xf32, #tpu.memory_space<vmem>>, vector<1x128xf32>
    %c0_7 = arith.constant 0 : index
    %c0_8 = arith.constant 0 : index
    %5 = vector.load %arg5[%c0_7, %c0_8] : memref<128x128xbf16, #tpu.memory_space<vmem>>, vector<128x128xbf16>
    %6 = arith.truncf %2 : vector<4x128xf32> to vector<4x128xbf16>
    %7 = arith.extf %6 : vector<4x128xbf16> to vector<4x128xf32>
    %8 = arith.subf %2, %7 : vector<4x128xf32>
    %9 = arith.truncf %8 : vector<4x128xf32> to vector<4x128xbf16>
    %cst = arith.constant dense<0.000000e+00> : vector<4x128xf32>
    %10 = tpu.matmul %6, %5, %cst {dimension_numbers = #tpu.dot_dimension_numbers<[1], [0], [0], [1], [0, 0, 1, 1], [], []>} : vector<4x128xbf16>, vector<128x128xbf16>, vector<4x128xf32> -> vector<4x128xf32>
    %cst_9 = arith.constant dense<0.000000e+00> : vector<4x128xf32>
    %11 = tpu.matmul %9, %5, %cst_9 {dimension_numbers = #tpu.dot_dimension_numbers<[1], [0], [0], [1], [0, 0, 1, 1], [], []>} : vector<4x128xbf16>, vector<128x128xbf16>, vector<4x128xf32> -> vector<4x128xf32>
    %12 = arith.addf %10, %11 : vector<4x128xf32>
    %cst_10 = arith.constant 3.125000e-02 : f32
    %13 = vector.broadcast %cst_10 : f32 to vector<4x128xf32>
    %14 = arith.mulf %12, %13 : vector<4x128xf32>
    %15 = arith.subf %2, %14 : vector<4x128xf32>
    %16 = arith.mulf %15, %15 : vector<4x128xf32>
    %17 = arith.truncf %16 : vector<4x128xf32> to vector<4x128xbf16>
    %18 = arith.extf %17 : vector<4x128xbf16> to vector<4x128xf32>
    %19 = arith.subf %16, %18 : vector<4x128xf32>
    %20 = arith.truncf %19 : vector<4x128xf32> to vector<4x128xbf16>
    %cst_11 = arith.constant dense<0.000000e+00> : vector<4x128xf32>
    %21 = tpu.matmul %17, %5, %cst_11 {dimension_numbers = #tpu.dot_dimension_numbers<[1], [0], [0], [1], [0, 0, 1, 1], [], []>} : vector<4x128xbf16>, vector<128x128xbf16>, vector<4x128xf32> -> vector<4x128xf32>
    %cst_12 = arith.constant dense<0.000000e+00> : vector<4x128xf32>
    %22 = tpu.matmul %20, %5, %cst_12 {dimension_numbers = #tpu.dot_dimension_numbers<[1], [0], [0], [1], [0, 0, 1, 1], [], []>} : vector<4x128xbf16>, vector<128x128xbf16>, vector<4x128xf32> -> vector<4x128xf32>
    %23 = arith.addf %21, %22 : vector<4x128xf32>
    %cst_13 = arith.constant 3.125000e-02 : f32
    %24 = vector.broadcast %cst_13 : f32 to vector<4x128xf32>
    %25 = arith.mulf %23, %24 : vector<4x128xf32>
    %cst_14 = arith.constant 9.99999974E-6 : f32
    %26 = vector.broadcast %cst_14 : f32 to vector<4x128xf32>
    %27 = arith.addf %25, %26 : vector<4x128xf32>
    %28 = math.rsqrt %27 : vector<4x128xf32>
    %29 = arith.mulf %15, %28 : vector<4x128xf32>
    %30 = vector.broadcast %3 : vector<1x128xf32> to vector<4x128xf32>
    %31 = arith.mulf %29, %30 : vector<4x128xf32>
    %32 = vector.broadcast %4 : vector<1x128xf32> to vector<4x128xf32>
    %33 = arith.addf %31, %32 : vector<4x128xf32>
    %c0_15 = arith.constant 0 : index
    %c0_16 = arith.constant 0 : index
    %34 = vector.load %arg6[%c0_15, %c0_16] : memref<4x128xf32, #tpu.memory_space<vmem>>, vector<4x128xf32>
    tpu.vector_store %arg6[%c0_15, %c0_16], %33 {strides = array<i32>} : memref<4x128xf32, #tpu.memory_space<vmem>>, vector<4x128xf32>,
    return
  }
  func.func @transform_0(%arg0: i32) -> (i32, i32) {
    %c0_i32 = arith.constant 0 : i32
    %c0_i32_0 = arith.constant 0 : i32
    return %arg0, %c0_i32 : i32, i32
  }
  func.func @transform_1(%arg0: i32) -> (i32, i32) {
    %c0_i32 = arith.constant 0 : i32
    %c0_i32_0 = arith.constant 0 : i32
    return %arg0, %c0_i32 : i32, i32
  }
  func.func @transform_2(%arg0: i32) -> (i32, i32) {
    %c0_i32 = arith.constant 0 : i32
    %c0_i32_0 = arith.constant 0 : i32
    %c0_i32_1 = arith.constant 0 : i32
    return %c0_i32, %c0_i32_0 : i32, i32
  }
  func.func @transform_3(%arg0: i32) -> (i32, i32) {
    %c0_i32 = arith.constant 0 : i32
    %c0_i32_0 = arith.constant 0 : i32
    %c0_i32_1 = arith.constant 0 : i32
    return %c0_i32, %c0_i32_0 : i32, i32
  }
  func.func @transform_4(%arg0: i32) -> (i32, i32) {
    %c0_i32 = arith.constant 0 : i32
    %c0_i32_0 = arith.constant 0 : i32
    %c0_i32_1 = arith.constant 0 : i32
    return %c0_i32, %c0_i32_0 : i32, i32
  }
  func.func @transform_5(%arg0: i32) -> (i32, i32) {
    %c0_i32 = arith.constant 0 : i32
    %c0_i32_0 = arith.constant 0 : i32
    return %arg0, %c0_i32 : i32, i32
  }
}

</mosaic_0001>

<bundles_post_ra>
// kernel: tpu_custom_call.1
= control target key start
LH: loop header
LB: loop body
LE: loop exit
PB: predicated region body
PF: predicated region fallthrough
CT: control target
= control target key end

     0   :  { %10 = vsyncpa [#allocation3], 0  ;;  %s442_s0 = inlined_call_operand.hbm [shape: f32[4,128], index: 0, kind: input, shape index: {}]   ;;  %s443_s1 = inlined_call_operand.hbm [shape: f32[4,128], index: 1, kind: input, shape index: {}]   ;;  %s444_s2 = inlined_call_operand.vmem [shape: f32[1,128], index: 2, kind: input, shape index: {}]   ;;  %s445_s3 = inlined_call_operand.vmem [shape: f32[1,128], index: 3, kind: input, shape index: {}]   ;;  %s446_s4 = inlined_call_operand.hbm [shape: bf16[128,128], index: 4, kind: input, shape index: {}]   ;;  %s447_s5 = inlined_call_operand.hbm [shape: f32[4,128], index: 5, kind: output, shape index: {}]  }
   0x1   :  { %11 = vsyncpa [#allocation6], 0  ;;  %s29_s20 = sshll.u32 %s443_s1, 4  ;;  %s30_s20 = int_to_ptr.hbm [resolvable:$true] %s29_s20 }
   0x2   :  { %12 = vsyncpa [#allocation4], 0  ;;  %s388_s21 = smov [#allocation5]   ;;  %s18_s25 = sshll.u32 %s442_s0, 4  ;;  %s19_s25 = int_to_ptr.hbm [resolvable:$true] %s18_s25 }
   0x3   :  { %s31_s22 = sshll.u32 %s388_s21, 4  ;;  %s389_s26 = smov [#allocation2]   ;;  %s32_s22 = int_to_ptr.vmem [resolvable:$true] %s31_s22 }
   0x4   :  { %34 = dma.hbm_to_vmem [thread:$0]  %s30_s20, 64, %s32_s22, [#allocation6]  }
   0x5   :  { %s20_s27 = sshll.u32 %s389_s26, 4  ;;  %s43_s30 = sshll.u32 %s446_s4, 4  ;;  %s21_s27 = int_to_ptr.vmem [resolvable:$true] %s20_s27  ;;  %s44_s30 = int_to_ptr.hbm [resolvable:$true] %s43_s30 }
   0x6   :  { %23 = dma.hbm_to_vmem [thread:$0]  %s19_s25, 64, %s21_s27, [#allocation3]  }
   0x7   :  { %s390_s1 = smov [#allocation7]   ;;  %s391_s7 = smov 64  }
   0x8   :  { %s45_s6 = sshll.u32 %s390_s1, 4  ;;  %s392_s8 = smov 4   ;;  %s46_s6 = int_to_ptr.vmem [resolvable:$true] %s45_s6 }
   0x9   :  { %51 = dma.hbm_to_vmem [thread:$0]  %s44_s30, 1024, %s46_s6, [#allocation6], %s391_s7, %s391_s7, %s392_s8  }
   0xa   :  { %382 = dma.done.wait [#allocation3], 64  }
   0xb   :  { %383 = vsyncadd [#allocation3], 4294967232 }
   0xc   :  { %384 = dma.done.wait [#allocation6], 1088  }
   0xd   :  { %385 = vsyncadd [#allocation6], 4294966208  ;;  %v275_v0 = vld [vmem:[#allocation7 + $0x38] sm:$0xff]  ;;  %v274_v1 = vld [vmem:[#allocation7 + $0x30] sm:$0xff]  ;;  %s393_s11 = smov [#allocation8]   ;;  %s225_s15 = sshll.u32 %s447_s5, 4  ;;  %s226_s15 = int_to_ptr.hbm [resolvable:$true] %s225_s15 }
   0xe   :  { %137 = vmatpush.bf16.msra.mxu0 %v275_v0  ;;  %150 = vmatpush.bf16.msra.mxu1 %v275_v0  ;;  %v273_v2 = vld [vmem:[#allocation7 + $0x28] sm:$0xff]  ;;  %v272_v3 = vld [vmem:[#allocation7 + $0x20] sm:$0xff]  ;;  %v64_v4 = vld [vmem:[#allocation2] sm:$0xf]  ;;  %s223_s12 = sshll.u32 %s393_s11, 4  ;;  %s224_s12 = int_to_ptr.vmem [resolvable:$true] %s223_s12 }
   0xf   :  { %183 = vmatpush.bf16.msra.mxu3 %v275_v0  ;;  %170 = vmatpush.bf16.msra.mxu2 %v275_v0  ;;  %v65_v5 = vld [vmem:[#allocation5] sm:$0xf]  ;;  %v270_v9 = vld [vmem:[#allocation7 + $0x10] sm:$0xff]  ;;  %v269_v11 = vld [vmem:[#allocation7 + $0x8] sm:$0xff] }
  0x10   :  { %v66_v6 = vadd.f32 %v65_v5, %v64_v4  ;;  %v271_v7 = vld [vmem:[#allocation7 + $0x18] sm:$0xff]  ;;  %v268_v13 = vld [vmem:[#allocation7] sm:$0xff] }
  0x11   :  { %v282_v40 = vld [vmem:[%s444_s2] ss:$0 sm:$0xff] }
  0x12   :  { %138 = vmatpush.bf16.msra.mxu0 %v274_v1  ;;  %151 = vmatpush.bf16.msra.mxu1 %v274_v1  ;;  %v85_v8 = vpack.c.bf16 %v66_v6, %v66_v6  ;;  %v283_v43 = vld [vmem:[%s445_s3] ss:$0 sm:$0xff] }
  0x13   :  { %184 = vmatpush.bf16.msra.mxu3 %v274_v1  ;;  %171 = vmatpush.bf16.msra.mxu2 %v274_v1 }
  0x14   :  { %v86_v10 = vunpack.c.l.bf16 %v85_v8 }
  0x16   :  { %139 = vmatpush.bf16.msra.mxu0 %v273_v2  ;;  %152 = vmatpush.bf16.msra.mxu1 %v273_v2  ;;  %v87_v12 = vsub.f32 %v66_v6, %v86_v10 }
  0x17   :  { %185 = vmatpush.bf16.msra.mxu3 %v273_v2  ;;  %172 = vmatpush.bf16.msra.mxu2 %v273_v2 }
  0x18   :  { %v88_v14 = vpack.c.bf16 %v87_v12, %v87_v12 }
  0x1a   :  { %140 = vmatpush.bf16.msra.mxu0 %v272_v3  ;;  %153 = vmatpush.bf16.msra.mxu1 %v272_v3 }
  0x1b   :  { %186 = vmatpush.bf16.msra.mxu3 %v272_v3  ;;  %173 = vmatpush.bf16.msra.mxu2 %v272_v3 }
  0x1e   :  { %141 = vmatpush.bf16.msra.mxu0 %v271_v7  ;;  %154 = vmatpush.bf16.msra.mxu1 %v271_v7 }
  0x1f   :  { %187 = vmatpush.bf16.msra.mxu3 %v271_v7  ;;  %174 = vmatpush.bf16.msra.mxu2 %v271_v7 }
  0x22   :  { %142 = vmatpush.bf16.msra.mxu0 %v270_v9  ;;  %155 = vmatpush.bf16.msra.mxu1 %v270_v9 }
  0x23   :  { %188 = vmatpush.bf16.msra.mxu3 %v270_v9  ;;  %175 = vmatpush.bf16.msra.mxu2 %v270_v9 }
  0x26   :  { %143 = vmatpush.bf16.msra.mxu0 %v269_v11  ;;  %156 = vmatpush.bf16.msra.mxu1 %v269_v11 }
  0x27   :  { %189 = vmatpush.bf16.msra.mxu3 %v269_v11  ;;  %176 = vmatpush.bf16.msra.mxu2 %v269_v11 }
  0x2a   :  { %144 = vmatpush.bf16.msra.mxu0 %v268_v13  ;;  %157 = vmatpush.bf16.msra.mxu1 %v268_v13 }
  0x2b   :  { %190 = vmatpush.bf16.msra.mxu3 %v268_v13  ;;  %177 = vmatpush.bf16.msra.mxu2 %v268_v13 }
  0x2d   :  { %145 = vmatmul.bf16.vlgmr.msra.gmra.mxu0 %v88_v14  ;;  %158 = vmatmul.bf16.vlgmr.msra.gmra.mxu1 %v85_v8 }
  0xaa   :  { %v146_v15 = vpop.f32.mrf.mxu0  ;;  %v159_v16 = vpop.f32.mrf.mxu1 }
  0xab   :  { %v160_v17 = vadd.f32 %v159_v16, %v146_v15 }
  0xad   :  { %v163_v18 = vmul.f32 0.03125, %v160_v17 }
  0xaf   :  { %v164_v19 = vsub.f32 %v66_v6, %v163_v18 }
  0xb1   :  { %v165_v20 = vmul.f32 %v164_v19, %v164_v19 }
  0xb2   :  { %v148_v21 = vpop.f32.mrf.mxu0  ;;  %v161_v22 = vpop.f32.mrf.mxu1 }
  0xb3   :  { %v166_v23 = vpack.c.bf16 %v165_v20, %v165_v20 }
  0xb5   :  { %v167_v24 = vunpack.c.l.bf16 %v166_v23  ;;  %191 = vmatmul.bf16.vlgmr.msra.gmra.mxu3 %v166_v23 }
  0xb7   :  { %v168_v25 = vsub.f32 %v165_v20, %v167_v24 }
  0xb9   :  { %v169_v26 = vpack.c.bf16 %v168_v25, %v168_v25 }
  0xbb   :  { %178 = vmatmul.bf16.vlgmr.msra.gmra.mxu2 %v169_v26 }
 0x138   :  { %v192_v27 = vpop.f32.mrf.mxu3 }
 0x13e   :  { %v179_v28 = vpop.f32.mrf.mxu2 }
 0x13f   :  { %v193_v29 = vadd.f32 %v192_v27, %v179_v28 }
 0x140   :  { %v194_v30 = vpop.f32.mrf.mxu3 }
 0x141   :  { %v196_v31 = vmul.f32 0.03125, %v193_v29 }
 0x143   :  { %v197_v32 = vadd.f32 1e-05, %v196_v31 }
 0x145   :  { %284 = vrsqrt.f32 %v197_v32  ;;  %vm204_vm1 = vweird.f32 %v197_v32 }
 0x146   :  { %v181_v33 = vpop.f32.mrf.mxu2 }
 0x14b   :  { %v285_v34 = vpop.eup %284 }
 0x14c   :  { %v199_v35 = vmul.f32 %v285_v34, %v197_v32  ;;  %vm205_vm0 = vweird.f32 %v285_v34 }
 0x14d   :  { %vm206_vm2 = vmor %vm204_vm1, %vm205_vm0 }
 0x14e   :  { %v200_v36 = vmul.f32 %v285_v34, %v199_v35 }
 0x150   :  { %v201_v37 = vmul.f32 0.5, %v200_v36 }
 0x152   :  { %v202_v38 = vsub.f32 1.5, %v201_v37 }
 0x154   :  { %v203_v39 = vmul.f32 %v285_v34, %v202_v38 }
 0x156   :  { %v207_v41 = vsel %vm206_vm2, %v285_v34, %v203_v39 }
 0x157   :  { %v208_v42 = vmul.f32 %v207_v41, %v164_v19 }
 0x159   :  { %v212_v44 = vmul.f32 %v282_v40, %v208_v42 }
 0x15b   :  { %v216_v45 = vadd.f32 %v283_v43, %v212_v44 }
 0x15d   :  { %217 = vst [vmem:[#allocation8] sm:$0xf] %v216_v45 }
 0x15e   :  { %228 = dma.vmem_to_hbm [thread:$0]  %s224_s12, 64, %s226_s15, [#allocation4]  }
 0x15f   :  { %386 = dma.done.wait [#allocation4], 64  }
 0x160   :  { %387 = vsyncadd [#allocation4], 4294967232 }
 0x161   :  { %233 = vsyncpa [#allocation3], 1 }
 0x162   :  { %234 = vsyncpa [#allocation6], 1 }
 0x163   :  { %235 = vsyncpa [#allocation4], 1 }

</bundles_post_ra>
